<compile_context>
chip_gen: v6e
topology: v6e:2x2x1
jax: 0.10.0
libtpu: 0.0.40
codegen_flags: <defaults>
</compile_context>

<pallas_src>
import functools

import jax
import jax.numpy as jnp
from jax.experimental import pallas as pl
from jax.experimental.pallas import tpu as pltpu

_EPS = 1e-8


def _cos_mse_kernel(v1_ref, v2_ref, y_ref, out_ref,
                    a12_ref, a11_ref, a22_ref, *, batch, tb, chunks):
    # All grid-position reads happen at the top level of the body.  Binding
    # pl.program_id inside a pl.when (lax.cond) branch breaks the interpret
    # fallback and gains nothing on TPU.
    b = pl.program_id(0)
    d = pl.program_id(1)
    nd = pl.num_programs(1)

    @pl.when(d == 0)
    def _init():
        a12_ref[...] = jnp.zeros_like(a12_ref)
        a11_ref[...] = jnp.zeros_like(a11_ref)
        a22_ref[...] = jnp.zeros_like(a22_ref)

    # Lane-wise accumulation: pure VPU work in the hot loop (loads, upcast,
    # mul, add).  `chunks` is a static tuple of (start, width); every chunk
    # has the same width == accumulator lane width.
    for start, width in chunks:
        v1 = v1_ref[:, start:start + width].astype(jnp.float32)
        v2 = v2_ref[:, start:start + width].astype(jnp.float32)
        a12_ref[...] += v1 * v2
        a11_ref[...] += v1 * v1
        a22_ref[...] += v2 * v2

    @pl.when(d == nd - 1)
    def _finalize():
        # Single cross-lane reduce per batch block.
        w12 = jnp.sum(a12_ref[...], axis=1, keepdims=True)   # (tb, 1)
        w11 = jnp.sum(a11_ref[...], axis=1, keepdims=True)
        w22 = jnp.sum(a22_ref[...], axis=1, keepdims=True)
        y = y_ref[...].astype(jnp.float32)                    # (tb, 1)
        denom = jnp.sqrt(jnp.maximum(w11 * w22, _EPS * _EPS))
        diff = w12 / denom - y
        # Mask padded rows of a partial last batch block (garbage padding can
        # be inf/NaN; jnp.where selects element-wise so it never propagates).
        row = b * tb + jax.lax.broadcasted_iota(jnp.int32, (tb, 1), 0)
        sq = jnp.where(row < batch, diff * diff, 0.0)
        # One lane-dense (1,8,128) store per batch block; wrapper reads [b,0,0].
        out_ref[...] = jnp.broadcast_to(jnp.sum(sq), out_ref.shape)


def _round_up(x, m):
    return ((x + m - 1) // m) * m


def _sublane_multiple(dtype):
    # Sub-32-bit dtypes pack along sublanes: 8 rows (f32), 16 (bf16), 32 (i8).
    return max(8, 32 // jnp.dtype(dtype).itemsize)


def _vmem_budget_bytes():
    """(input double-buffer budget, vmem_limit_bytes), generation-aware."""
    cap = None
    try:
        cap = getattr(pltpu.get_tpu_info(), "vmem_capacity_bytes", None)
    except Exception:
        cap = None
    if cap is not None and cap >= 100 * 1024 * 1024:
        # v5e / v6e: 128 MiB VMEM -> larger blocks amortize per-step overhead.
        return 40 * 1024 * 1024, 96 * 1024 * 1024
    # v7x (64 MiB physical per TC) or unknown backend: stay conservative.
    return 20 * 1024 * 1024, 48 * 1024 * 1024


def _choose_tiles(B, D, dtype, budget):
    itemsize = jnp.dtype(dtype).itemsize
    mult = _sublane_multiple(dtype)
    # D tile: a multiple-of-128 divisor of D when possible, else the full D.
    td = D
    if D % 128 == 0:
        for cand in (2048, 1024, 512, 256, 128):
            if cand <= D and D % cand == 0:
                td = cand
                break
    # TODO(synk): huge D that is not a multiple of 128 would need a masked
    # D-tail tile; here we fall back to a single full-width block.
    tb = budget // (4 * td * itemsize)       # 2 inputs x 2 pipeline buffers
    tb = max(mult, (tb // mult) * mult)
    # Keep >= ~4 batch blocks so the "parallel" axis feeds both v7x TCs, but
    # never shrink below 64 rows just for occupancy.
    occ = _round_up(pl.cdiv(B, 4), mult)
    tb = min(tb, max(occ, 64))
    tb = min(tb, _round_up(B, mult))
    return max(tb, mult), td


def cosine_similarity_regression_loss(vec1, vec2, y, *,
                                      force_pallas=False, tb=None, td=None):
    """vec1, vec2: (B, D); y: (B,). Returns scalar f32 MSE of cosine sims."""
    assert vec1.shape == vec2.shape and vec1.ndim == 2
    B, D = vec1.shape
    assert y.shape == (B,)

    if not force_pallas and B * D <= 16384:
        # Tiny problem: pallas_call launch overhead dominates; let XLA fuse.
        return _reference(vec1, vec2, y)

    budget, vmem_limit = _vmem_budget_bytes()
    dtb, dtd = _choose_tiles(B, D, vec1.dtype, budget)
    tb = dtb if tb is None else tb
    td = dtd if td is None else td
    assert tb % 8 == 0, "tb must be a multiple of 8"
    assert D % td == 0, "td must evenly divide D (no masked D-tail support)"
    nb = pl.cdiv(B, tb)
    nd = D // td

    if td % 128 == 0:
        chunks = tuple((k * 128, 128) for k in range(td // 128))
    else:
        chunks = ((0, td),)
    accw = chunks[0][1]

    y2d = y.reshape(B, 1)
    kernel = functools.partial(_cos_mse_kernel, batch=B, tb=tb, chunks=chunks)

    blk_sums = pl.pallas_call(
        kernel,
        out_shape=jax.ShapeDtypeStruct((nb, 8, 128), jnp.float32),
        grid_spec=pltpu.PrefetchScalarGridSpec(
            num_scalar_prefetch=0,
            grid=(nb, nd),
            in_specs=[
                pl.BlockSpec((tb, td), lambda b, d: (b, d)),
                pl.BlockSpec((tb, td), lambda b, d: (b, d)),
                pl.BlockSpec((tb, 1), lambda b, d: (b, 0)),
            ],
            out_specs=pl.BlockSpec((1, 8, 128), lambda b, d: (b, 0, 0)),
            scratch_shapes=[pltpu.VMEM((tb, accw), jnp.float32)] * 3,
        ),
        compiler_params=pltpu.CompilerParams(
            dimension_semantics=("parallel", "arbitrary"),
            vmem_limit_bytes=vmem_limit,
        ),
    )(vec1, vec2, y2d)

    return jnp.sum(blk_sums[:, 0, 0]) / jnp.float32(B)


def _reference(vec1, vec2, y):
    v1 = vec1.astype(jnp.float32)
    v2 = vec2.astype(jnp.float32)
    w12 = jnp.sum(v1 * v2, axis=1)
    w11 = jnp.sum(v1 * v1, axis=1)
    w22 = jnp.sum(v2 * v2, axis=1)
    y_hat = w12 / jnp.sqrt(jnp.maximum(w11 * w22, _EPS * _EPS))
    return jnp.mean((y_hat - y.astype(jnp.float32)) ** 2)


if __name__ == "__main__":
    key = jax.random.PRNGKey(0)

    # --- Test 1: small shape, single-block grid, forced through Pallas.
    k1, k2, k3, key = jax.random.split(key, 4)
    B, D = 8, 32
    vec1 = jax.random.normal(k1, (B, D), dtype=jnp.float32)
    vec2 = jax.random.normal(k2, (B, D), dtype=jnp.float32)
    y = jax.random.uniform(k3, (B,), dtype=jnp.float32, minval=-1.0, maxval=1.0)
    loss = cosine_similarity_regression_loss(vec1, vec2, y, force_pallas=True)
    jax.block_until_ready(loss)
    ref = _reference(vec1, vec2, y)
    assert jnp.allclose(loss, ref, rtol=1e-4, atol=1e-6), (loss, ref)

    # --- Test 2: B tiling with a partial last block + D tiling.
    k1, k2, k3, key = jax.random.split(key, 4)
    B, D = 100, 512
    vec1 = jax.random.normal(k1, (B, D), dtype=jnp.float32)
    vec2 = jax.random.normal(k2, (B, D), dtype=jnp.float32)
    y = jax.random.uniform(k3, (B,), dtype=jnp.float32, minval=-1.0, maxval=1.0)
    loss = cosine_similarity_regression_loss(
        vec1, vec2, y, force_pallas=True, tb=32, td=128)
    jax.block_until_ready(loss)
    ref = _reference(vec1, vec2, y)
    assert jnp.allclose(loss, ref, rtol=1e-4, atol=1e-6), (loss, ref)

    # --- Test 3: bf16 inputs streamed in storage dtype, f32 accumulation.
    k1, k2, k3, key = jax.random.split(key, 4)
    B, D = 64, 256
    vec1 = jax.random.normal(k1, (B, D), dtype=jnp.bfloat16)
    vec2 = jax.random.normal(k2, (B, D), dtype=jnp.bfloat16)
    y = jax.random.uniform(k3, (B,), dtype=jnp.float32, minval=-1.0, maxval=1.0)
    loss = cosine_similarity_regression_loss(
        vec1, vec2, y, force_pallas=True, tb=16, td=128)
    jax.block_until_ready(loss)
    ref = _reference(vec1, vec2, y)
    assert jnp.allclose(loss, ref, rtol=1e-3, atol=1e-5), (loss, ref)

    # --- Test 4: default tile chooser path (generation-aware budget).
    k1, k2, k3, key = jax.random.split(key, 4)
    B, D = 96, 384
    vec1 = jax.random.normal(k1, (B, D), dtype=jnp.float32)
    vec2 = jax.random.normal(k2, (B, D), dtype=jnp.float32)
    y = jax.random.uniform(k3, (B,), dtype=jnp.float32, minval=-1.0, maxval=1.0)
    loss = cosine_similarity_regression_loss(vec1, vec2, y, force_pallas=True)
    jax.block_until_ready(loss)
    ref = _reference(vec1, vec2, y)
    assert jnp.allclose(loss, ref, rtol=1e-4, atol=1e-6), (loss, ref)

    print("KERNEL_OK")
</pallas_src>

<mosaic_0001>
module attributes {stable_mosaic.version = 11 : i64} {
  func.func @_cos_mse_kernel(%arg0: i32, %arg1: i32, %arg2: memref<8x32xf32, #tpu.memory_space<vmem>>, %arg3: memref<8x32xf32, #tpu.memory_space<vmem>>, %arg4: memref<8x1xf32, #tpu.memory_space<vmem>>, %arg5: memref<1x8x128xf32, #tpu.memory_space<vmem>>, %arg6: memref<8x32xf32, #tpu.memory_space<vmem>>, %arg7: memref<8x32xf32, #tpu.memory_space<vmem>>, %arg8: memref<8x32xf32, #tpu.memory_space<vmem>>) attributes {dimension_semantics = [#tpu.dimension_semantics<parallel>, #tpu.dimension_semantics<arbitrary>], iteration_bounds = array<i64: 1, 1>, scalar_prefetch = 0 : i64, scratch_operands = 3 : i64, tpu.core_type = #tpu.core_type<tc>, window_params = [{transform_indices = @transform_0, window_bounds = array<i64: 8, 32>}, {transform_indices = @transform_1, window_bounds = array<i64: 8, 32>}, {transform_indices = @transform_2, window_bounds = array<i64: 8, 1>}, {transform_indices = @transform_3, window_bounds = array<i64: 1, 8, 128>}]} {
    %c0_i32 = arith.constant 0 : i32
    %0 = arith.cmpi eq, %arg1, %c0_i32 : i32
    %1 = arith.extui %0 : i1 to i32
    %c0_i32_0 = arith.constant 0 : i32
    %2 = arith.cmpi ne, %1, %c0_i32_0 : i32
    scf.if %2 {
      %cst = arith.constant 0.000000e+00 : f32
      %20 = vector.broadcast %cst : f32 to vector<8x32xf32>
      %c0_18 = arith.constant 0 : index
      %c0_19 = arith.constant 0 : index
      %21 = vector.load %arg6[%c0_18, %c0_19] : memref<8x32xf32, #tpu.memory_space<vmem>>, vector<8x32xf32>
      tpu.vector_store %arg6[%c0_18, %c0_19], %20 {strides = array<i32>} : memref<8x32xf32, #tpu.memory_space<vmem>>, vector<8x32xf32>,
      %cst_20 = arith.constant 0.000000e+00 : f32
      %22 = vector.broadcast %cst_20 : f32 to vector<8x32xf32>
      %c0_21 = arith.constant 0 : index
      %c0_22 = arith.constant 0 : index
      %23 = vector.load %arg7[%c0_21, %c0_22] : memref<8x32xf32, #tpu.memory_space<vmem>>, vector<8x32xf32>
      tpu.vector_store %arg7[%c0_21, %c0_22], %22 {strides = array<i32>} : memref<8x32xf32, #tpu.memory_space<vmem>>, vector<8x32xf32>,
      %cst_23 = arith.constant 0.000000e+00 : f32
      %24 = vector.broadcast %cst_23 : f32 to vector<8x32xf32>
      %c0_24 = arith.constant 0 : index
      %c0_25 = arith.constant 0 : index
      %25 = vector.load %arg8[%c0_24, %c0_25] : memref<8x32xf32, #tpu.memory_space<vmem>>, vector<8x32xf32>
      tpu.vector_store %arg8[%c0_24, %c0_25], %24 {strides = array<i32>} : memref<8x32xf32, #tpu.memory_space<vmem>>, vector<8x32xf32>,
    } else {
    }
    %c0 = arith.constant 0 : index
    %c0_1 = arith.constant 0 : index
    %3 = vector.load %arg2[%c0, %c0_1] : memref<8x32xf32, #tpu.memory_space<vmem>>, vector<8x32xf32>
    %c0_2 = arith.constant 0 : index
    %c0_3 = arith.constant 0 : index
    %4 = vector.load %arg3[%c0_2, %c0_3] : memref<8x32xf32, #tpu.memory_space<vmem>>, vector<8x32xf32>
    %c0_4 = arith.constant 0 : index
    %c0_5 = arith.constant 0 : index
    %5 = vector.load %arg6[%c0_4, %c0_5] : memref<8x32xf32, #tpu.memory_space<vmem>>, vector<8x32xf32>
    %6 = arith.mulf %3, %4 : vector<8x32xf32>
    %7 = arith.addf %5, %6 : vector<8x32xf32>
    %c0_6 = arith.constant 0 : index
    %c0_7 = arith.constant 0 : index
    %8 = vector.load %arg6[%c0_6, %c0_7] : memref<8x32xf32, #tpu.memory_space<vmem>>, vector<8x32xf32>
    tpu.vector_store %arg6[%c0_6, %c0_7], %7 {strides = array<i32>} : memref<8x32xf32, #tpu.memory_space<vmem>>, vector<8x32xf32>,
    %c0_8 = arith.constant 0 : index
    %c0_9 = arith.constant 0 : index
    %9 = vector.load %arg7[%c0_8, %c0_9] : memref<8x32xf32, #tpu.memory_space<vmem>>, vector<8x32xf32>
    %10 = arith.mulf %3, %3 : vector<8x32xf32>
    %11 = arith.addf %9, %10 : vector<8x32xf32>
    %c0_10 = arith.constant 0 : index
    %c0_11 = arith.constant 0 : index
    %12 = vector.load %arg7[%c0_10, %c0_11] : memref<8x32xf32, #tpu.memory_space<vmem>>, vector<8x32xf32>
    tpu.vector_store %arg7[%c0_10, %c0_11], %11 {strides = array<i32>} : memref<8x32xf32, #tpu.memory_space<vmem>>, vector<8x32xf32>,
    %c0_12 = arith.constant 0 : index
    %c0_13 = arith.constant 0 : index
    %13 = vector.load %arg8[%c0_12, %c0_13] : memref<8x32xf32, #tpu.memory_space<vmem>>, vector<8x32xf32>
    %14 = arith.mulf %4, %4 : vector<8x32xf32>
    %15 = arith.addf %13, %14 : vector<8x32xf32>
    %c0_14 = arith.constant 0 : index
    %c0_15 = arith.constant 0 : index
    %16 = vector.load %arg8[%c0_14, %c0_15] : memref<8x32xf32, #tpu.memory_space<vmem>>, vector<8x32xf32>
    tpu.vector_store %arg8[%c0_14, %c0_15], %15 {strides = array<i32>} : memref<8x32xf32, #tpu.memory_space<vmem>>, vector<8x32xf32>,
    %c0_i32_16 = arith.constant 0 : i32
    %17 = arith.cmpi eq, %arg1, %c0_i32_16 : i32
    %18 = arith.extui %17 : i1 to i32
    %c0_i32_17 = arith.constant 0 : i32
    %19 = arith.cmpi ne, %18, %c0_i32_17 : i32
    scf.if %19 {
      %c0_18 = arith.constant 0 : index
      %c0_19 = arith.constant 0 : index
      %20 = vector.load %arg6[%c0_18, %c0_19] : memref<8x32xf32, #tpu.memory_space<vmem>>, vector<8x32xf32>
      %cst = arith.constant dense<0.000000e+00> : vector<8xf32>
      %21 = vector.multi_reduction <add>, %20, %cst [1] : vector<8x32xf32> to vector<8xf32>
      %22 = vector.shape_cast %21 : vector<8xf32> to vector<8x1xf32>
      %c0_20 = arith.constant 0 : index
      %c0_21 = arith.constant 0 : index
      %23 = vector.load %arg7[%c0_20, %c0_21] : memref<8x32xf32, #tpu.memory_space<vmem>>, vector<8x32xf32>
      %cst_22 = arith.constant dense<0.000000e+00> : vector<8xf32>
      %24 = vector.multi_reduction <add>, %23, %cst_22 [1] : vector<8x32xf32> to vector<8xf32>
      %25 = vector.shape_cast %24 : vector<8xf32> to vector<8x1xf32>
      %c0_23 = arith.constant 0 : index
      %c0_24 = arith.constant 0 : index
      %26 = vector.load %arg8[%c0_23, %c0_24] : memref<8x32xf32, #tpu.memory_space<vmem>>, vector<8x32xf32>
      %cst_25 = arith.constant dense<0.000000e+00> : vector<8xf32>
      %27 = vector.multi_reduction <add>, %26, %cst_25 [1] : vector<8x32xf32> to vector<8xf32>
      %28 = vector.shape_cast %27 : vector<8xf32> to vector<8x1xf32>
      %c0_26 = arith.constant 0 : index
      %c0_27 = arith.constant 0 : index
      %29 = vector.load %arg4[%c0_26, %c0_27] : memref<8x1xf32, #tpu.memory_space<vmem>>, vector<8x1xf32>
      %30 = arith.mulf %25, %28 : vector<8x1xf32>
      %cst_28 = arith.constant 1.000000e-16 : f32
      %31 = vector.broadcast %cst_28 : f32 to vector<8x1xf32>
      %32 = arith.maximumf %30, %31 : vector<8x1xf32>
      %33 = math.sqrt %32 : vector<8x1xf32>
      %34 = arith.divf %22, %33 : vector<8x1xf32>
      %35 = arith.subf %34, %29 : vector<8x1xf32>
      %c8_i32 = arith.constant 8 : i32
      %36 = arith.muli %arg0, %c8_i32 : i32
      %37 = tpu.iota {dimensions = array<i32: 0>} : vector<8x1xi32>
      %38 = vector.broadcast %36 : i32 to vector<8x1xi32>
      %39 = arith.addi %38, %37 : vector<8x1xi32>
      %c8_i32_29 = arith.constant 8 : i32
      %40 = vector.broadcast %c8_i32_29 : i32 to vector<8x1xi32>
      %41 = arith.cmpi slt, %39, %40 : vector<8x1xi32>
      %42 = arith.mulf %35, %35 : vector<8x1xf32>
      %cst_30 = arith.constant 0.000000e+00 : f32
      %43 = vector.broadcast %cst_30 : f32 to vector<8x1xf32>
      %44 = arith.select %41, %42, %43 : vector<8x1xi1>, vector<8x1xf32>
      %45 = vector.shape_cast %44 : vector<8x1xf32> to vector<1x8x1xf32>
      %cst_31 = arith.constant dense<0.000000e+00> : vector<1xf32>
      %46 = vector.multi_reduction <add>, %45, %cst_31 [1, 2] : vector<1x8x1xf32> to vector<1xf32>
      %47 = vector.shape_cast %46 : vector<1xf32> to vector<1x1x1xf32>
      %48 = vector.extract %47[0, 0, 0] : f32 from vector<1x1x1xf32>
      %49 = vector.broadcast %48 : f32 to vector<1x8x128xf32>
      %c0_32 = arith.constant 0 : index
      %c0_33 = arith.constant 0 : index
      %c0_34 = arith.constant 0 : index
      %50 = vector.load %arg5[%c0_32, %c0_33, %c0_34] : memref<1x8x128xf32, #tpu.memory_space<vmem>>, vector<1x8x128xf32>
      tpu.vector_store %arg5[%c0_32, %c0_33, %c0_34], %49 {strides = array<i32>} : memref<1x8x128xf32, #tpu.memory_space<vmem>>, vector<1x8x128xf32>,
    } else {
    }
    return
  }
  func.func @transform_0(%arg0: i32, %arg1: i32) -> (i32, i32) {
    %c0_i32 = arith.constant 0 : i32
    return %arg0, %arg1 : i32, i32
  }
  func.func @transform_1(%arg0: i32, %arg1: i32) -> (i32, i32) {
    %c0_i32 = arith.constant 0 : i32
    return %arg0, %arg1 : i32, i32
  }
  func.func @transform_2(%arg0: i32, %arg1: i32) -> (i32, i32) {
    %c0_i32 = arith.constant 0 : i32
    %c0_i32_0 = arith.constant 0 : i32
    return %arg0, %c0_i32 : i32, i32
  }
  func.func @transform_3(%arg0: i32, %arg1: i32) -> (i32, i32, i32) {
    %c0_i32 = arith.constant 0 : i32
    %c0_i32_0 = arith.constant 0 : i32
    %c0_i32_1 = arith.constant 0 : i32
    return %arg0, %c0_i32, %c0_i32_0 : i32, i32, i32
  }
}

</mosaic_0001>

<bundles_post_ra>
// kernel: tpu_custom_call.1
= control target key start
LH: loop header
LB: loop body
LE: loop exit
PB: predicated region body
PF: predicated region fallthrough
CT: control target
= control target key end

     0   :  { %8 = vsyncpa [#allocation6], 0  ;;  %s211_s0 = inlined_call_operand.vmem [shape: f32[8,32], index: 0, kind: input, shape index: {}]   ;;  %s212_s1 = inlined_call_operand.hbm [shape: f32[8,32], index: 1, kind: input, shape index: {}]   ;;  %s213_s2 = inlined_call_operand.vmem [shape: f32[8,1], index: 2, kind: input, shape index: {}]   ;;  %s214_s3 = inlined_call_operand.hbm [shape: f32[1,8,128], index: 3, kind: output, shape index: {}]  }
   0x1   :  { %9 = vsyncpa [#allocation7], 0  ;;  %s167_s12 = smov [#allocation5]  }
   0x2   :  { %s18_s13 = sshll.u32 %s167_s12, 4  ;;  %s19_s13 = int_to_ptr.vmem [resolvable:$true] %s18_s13 }
   0x3   :  { %s131_s14 = scalar_lea.vmem %s19_s13, 128  ;;  %p136_p1 = scmp.lt.s32.totalorder %s19_s13, %s19_s13 }
   0x4   :  { %p132_p0 = scmp.ne.s32.totalorder %s19_s13, %s131_s14  ;;  %p137_p2 = scmp.lt.s32.totalorder %s131_s14, %s131_s14 }
   0x6   :  { %p138_p3 = por %p137_p2, %p136_p1 }
   0x8   :  { %p139_p4 = pnand %p138_p3, %p132_p0 }
   0xa   :  { %142 = shalt.err (!%p139_p4)
}
   0xb   :  { %21 = dma.hbm_to_vmem [thread:$0]  %s212_s1, 128, %s19_s13, [#allocation6]  }
   0xc   :  { %163 = dma.done.wait [#allocation6], 128  }
   0xd   :  { %164 = vsyncadd [#allocation6], 4294967168  ;;  %vm31_vm0 = vcmask 261120   ;;  %v168_v0 = vmov 0.0   ;;  %v35_v1 = vld [vmem:[%s211_s0] sm:$0xff]  ;;  %v36_v2 = vld [vmem:[#allocation5] sm:$0xff] }
   0xe   :  { %33 = vst.msk [vmem:[#allocation3] sm:$0xff] %vm31_vm0, %v168_v0  ;;  %32 = vst.msk [vmem:[#allocation2] sm:$0xff] %vm31_vm0, %v168_v0  ;;  %v43_v4 = vmul.f32 %v35_v1, %v35_v1  ;;  %v47_v6 = vmul.f32 %v36_v2, %v36_v2  ;;  %v38_v8 = vmul.f32 %v36_v2, %v35_v1  ;;  %v65_v29 = vld [vmem:[%s213_s2] sm:$0xff]  ;;  %vm86_vm3 = vcmask 7168   ;;  %s169_s19 = smov [#allocation8]  }
   0xf   :  { %34 = vst.msk [vmem:[#allocation4] sm:$0xff] %vm31_vm0, %v168_v0  ;;  %s105_s20 = sshll.u32 %s169_s19, 4  ;;  %s106_s20 = int_to_ptr.vmem [resolvable:$true] %s105_s20 }
  0x10   :  { %s143_s2 = scalar_lea.vmem %s106_s20, 128  ;;  %p148_p6 = scmp.lt.s32.totalorder %s106_s20, %s106_s20 }
  0x11   :  { %p144_p5 = scmp.ne.s32.totalorder %s106_s20, %s143_s2  ;;  %p149_p7 = scmp.lt.s32.totalorder %s143_s2, %s143_s2 }
  0x13   :  { %p150_p8 = por %p149_p7, %p148_p6 }
  0x15   :  { %v42_v3 = vld [vmem:[#allocation3] sm:$0xff]  ;;  %v37_v7 = vld [vmem:[#allocation2] sm:$0xff]  ;;  %p151_p9 = pnand %p150_p8, %p144_p5 }
  0x16   :  { %v46_v5 = vld [vmem:[#allocation4] sm:$0xff]  ;;  %v44_v9 = vadd.f32 %v43_v4, %v42_v3  ;;  %v39_v11 = vadd.f32 %v38_v8, %v37_v7 }
  0x17   :  { %v48_v10 = vadd.f32 %v47_v6, %v46_v5 }
  0x18   :  { %45 = vst.msk [vmem:[#allocation3] sm:$0xff] %vm31_vm0, %v44_v9  ;;  %41 = vst.msk [vmem:[#allocation2] sm:$0xff] %vm31_vm0, %v39_v11 }
  0x19   :  { %49 = vst.msk [vmem:[#allocation4] sm:$0xff] %vm31_vm0, %v48_v10 }
  0x1f   :  { %v57_v12 = vld [vmem:[#allocation3] sm:$0xff]  ;;  %v53_v14 = vld [vmem:[#allocation2] sm:$0xff] }
  0x20   :  { %v61_v13 = vld [vmem:[#allocation4] sm:$0xff]  ;;  %v58_v15 = vsel %vm31_vm0, %v57_v12, 0.0  ;;  %v54_v16 = vsel %vm31_vm0, %v53_v14, 0.0 }
  0x21   :  { %59 = vadd.xlane.f32.xlu0 %v58_v15  ;;  %55 = vadd.xlane.f32.xlu1 %v54_v16  ;;  %v62_v17 = vsel %vm31_vm0, %v61_v13, 0.0 }
  0x25   :  { %63 = vadd.xlane.f32.xlu0 %v62_v17 }
  0xaa   :  { %v60_v18 = vpop.xlane.xlu0 %59  ;;  %v56_v27 = vpop.xlane.xlu1 %55 }
  0xae   :  { %v64_v19 = vpop.xlane.xlu0 %63 }
  0xaf   :  { %v66_v20 = vmul.f32 %v64_v19, %v60_v18 }
  0xb1   :  { %v67_v21 = vmax.f32 %v66_v20, 1e-16 }
  0xb3   :  { %119 = vrsqrt.f32 %v67_v21  ;;  %vm70_vm1 = vcmp.eq.f32.partialorder %v67_v21, inf  ;;  %v73_v24 = vand.u32 2147483648, %v67_v21  ;;  %vm72_vm2 = vcmp.eq.f32.partialorder %v67_v21, 0.0 }
  0xc0   :  { %v120_v22 = vpop.eup %119 }
  0xc1   :  { %v69_v23 = vmul.f32 %v120_v22, %v67_v21 }
  0xc3   :  { %v71_v25 = vsel %vm70_vm1, %v67_v21, %v69_v23 }
  0xc4   :  { %v74_v26 = vsel %vm72_vm2, %v73_v24, %v71_v25 }
  0xc5   :  { %121 = vrcp.f32 %v74_v26 }
  0xd2   :  { %v122_v28 = vpop.eup %121 }
  0xd3   :  { %v76_v30 = vmul.f32 %v122_v28, %v56_v27 }
  0xd5   :  { %v77_v31 = vsub.f32 %v76_v30, %v65_v29 }
  0xd7   :  { %v84_v32 = vmul.f32 %v77_v31, %v77_v31 }
  0xd9   :  { %v87_v33 = vsel %vm86_vm3, %v84_v32, 0.0 }
  0xda   :  { %88 = vadd.xlane.f32.xlu1 %v87_v33 }
 0x163   :  { %v89_v34 = vpop.xlane.xlu1 %88 }
 0x164   :  { %v90_v35 = vrot.slane %v89_v34, 4 }
 0x166   :  { %v91_v36 = vadd.f32 %v90_v35, %v89_v34 }
 0x168   :  { %v92_v37 = vrot.slane %v91_v36, 2 }
 0x16a   :  { %v93_v38 = vadd.f32 %v92_v37, %v91_v36 }
 0x16c   :  { %v94_v39 = vrot.slane %v93_v38, 1 }
 0x16e   :  { %v95_v40 = vadd.f32 %v94_v39, %v93_v38 }
 0x170   :  { %114 = vpush %v95_v40 }
 0x1a1   :  { %s115_s21 = spop %114 }
 0x1a2   :  { %v97_v41 = vstv %s115_s21 }
 0x1a3   :  { %98 = vst [vmem:[#allocation8] sm:$0xff] %v97_v41 }
 0x1a4   :  { %154 = shalt.err (!%p151_p9)
}
 0x1a5   :  { %108 = dma.vmem_to_hbm [thread:$0]  %s106_s20, 128, %s214_s3, [#allocation7]  }
 0x1a6   :  { %165 = dma.done.wait [#allocation7], 128  }
 0x1a7   :  { %166 = vsyncadd [#allocation7], 4294967168 }
 0x1a8   :  { %112 = vsyncpa [#allocation6], 1 }
 0x1a9   :  { %113 = vsyncpa [#allocation7], 1 }

</bundles_post_ra>
